<compile_context>
chip_gen: v7x
topology: tpu7x:2x2x1
jax: 0.10.0
libtpu: 0.0.40
codegen_flags: <defaults>
</compile_context>

<pallas_src>
import functools
from typing import NamedTuple

import numpy as np
import jax
import jax.numpy as jnp
from jax.experimental import pallas as pl
from jax.experimental.pallas import tpu as pltpu


# ----------------------------- constants -------------------------------------
_VMEM_BUDGET = 48 << 20        # portable sizing target (headroom on v7x 64 MiB/TC)
_RESIDENT_W_MAX = 32 << 20     # keep weight fully VMEM-resident up to this size
_W_TILE_TARGET = 8 << 20       # per-tile weight bytes when N/K tiling kicks in
_PALLAS_MIN_FLOPS = 1 << 17    # below this, a standalone pallas_call is overhead


# ----------------------------- small helpers ---------------------------------
def _cdiv(a, b):
    return -(-a // b)


def _round_up(x, m):
    return _cdiv(x, m) * m


def _choose_tile(total, max_tile, multiple):
    """Largest divisor of `total` that is <= max_tile and a multiple of `multiple`."""
    best = min(multiple, total)
    for t in range(multiple, min(total, max_tile) + 1, multiple):
        if total % t == 0:
            best = t
    return best


def _choose_block_b(B, row_align, cap):
    """Batch tile: VMEM-capped, sublane-aligned, >=2 tiles when big (megacore),
    and with a small padded tail (avoid B=513 -> B_pad=1024 blowups)."""
    b_full = _round_up(B, row_align)
    if b_full <= cap:
        if b_full >= 2 * 128:                       # big enough to split across 2 TCs
            return _round_up(_cdiv(B, 2), row_align)
        return b_full
    n_tiles = _cdiv(B, cap)
    return _round_up(_cdiv(B, n_tiles), row_align)


# ----------------------------- kernels ---------------------------------------
def _fc_kernel(x_ref, w_ref, b_ref, o_ref):
    # x may arrive wider than the MXU feed (e.g. f32 x, bf16 weight): cast the
    # tile in VMEM right before the dot; accumulate in f32 on the MXU.
    y = jnp.dot(x_ref[...].astype(w_ref.dtype), w_ref[...],
                preferred_element_type=jnp.float32)
    # Bias add + ReLU stay f32 on the VPU (v5e-safe); single cast on the store.
    o_ref[...] = jnp.maximum(y + b_ref[...], 0.0).astype(o_ref.dtype)


def _fc_kernel_ksplit(x_ref, w_ref, b_ref, o_ref, acc_ref):
    # Grid = (batch, N, K); K is the last ("arbitrary") axis, so the output /
    # accumulator block is resident across K and written once in the epilogue.
    @pl.when(pl.program_id(2) == 0)
    def _():
        acc_ref[...] = jnp.zeros_like(acc_ref)

    acc_ref[...] += jnp.dot(x_ref[...].astype(w_ref.dtype), w_ref[...],
                            preferred_element_type=jnp.float32)

    @pl.when(pl.program_id(2) == pl.num_programs(2) - 1)
    def _():
        o_ref[...] = jnp.maximum(acc_ref[...] + b_ref[...], 0.0).astype(o_ref.dtype)


# ----------------------------- pallas_call builder ----------------------------
@functools.lru_cache(maxsize=None)
def _build_fc_pallas_call(B_pad, IN_pad, OUT_pad, block_b, block_n, block_k,
                          x_dtype, w_dtype, out_dtype, single_buffer):
    x_dtype, w_dtype, out_dtype = map(np.dtype, (x_dtype, w_dtype, out_dtype))
    nb, nn, nk = B_pad // block_b, OUT_pad // block_n, IN_pad // block_k

    w_invariant = (nn == 1 and nk == 1)
    b_invariant = (nn == 1)
    w_mode = pl.Buffered(1) if (single_buffer and w_invariant) else None
    b_mode = pl.Buffered(1) if (single_buffer and b_invariant) else None

    def _spec(shape, index_map, mode=None):
        kw = dict(memory_space=pltpu.MemorySpace.VMEM)
        if mode is not None:
            kw["pipeline_mode"] = mode
        return pl.BlockSpec(shape, index_map, **kw)

    if nk == 1:
        grid = (nb, nn)
        in_specs = [
            _spec((block_b, block_k), lambda i, j: (i, 0)),              # x
            _spec((block_k, block_n), lambda i, j: (0, j), w_mode),      # weight
            _spec((1, block_n), lambda i, j: (0, j), b_mode),            # bias
        ]
        out_specs = _spec((block_b, block_n), lambda i, j: (i, j))
        kernel, scratch = _fc_kernel, ()
        dims = ("parallel", "parallel")
    else:
        grid = (nb, nn, nk)
        in_specs = [
            _spec((block_b, block_k), lambda i, j, k: (i, k)),           # x
            _spec((block_k, block_n), lambda i, j, k: (k, j), w_mode),   # weight
            _spec((1, block_n), lambda i, j, k: (0, j), b_mode),         # bias
        ]
        out_specs = _spec((block_b, block_n), lambda i, j, k: (i, j))
        kernel = _fc_kernel_ksplit
        scratch = (pltpu.VMEM((block_b, block_n), jnp.float32),)
        dims = ("parallel", "parallel", "arbitrary")

    # Scoped-VMEM limit from the actual footprint, with headroom.
    w_bufs = 1 if w_mode is not None else 2
    b_bufs = 1 if b_mode is not None else 2
    footprint = (w_bufs * block_k * block_n * w_dtype.itemsize
                 + b_bufs * block_n * 4
                 + 2 * block_b * block_k * x_dtype.itemsize
                 + 2 * block_b * block_n * out_dtype.itemsize
                 + (block_b * block_n * 4 if nk > 1 else 0))
    vmem_limit = min(max(int(footprint * 1.5) + (2 << 20), 32 << 20), 64 << 20)

    cost = pl.CostEstimate(
        flops=2 * B_pad * IN_pad * OUT_pad,
        transcendentals=0,
        bytes_accessed=(B_pad * IN_pad * x_dtype.itemsize
                        + IN_pad * OUT_pad * w_dtype.itemsize
                        + OUT_pad * 4
                        + B_pad * OUT_pad * out_dtype.itemsize),
    )

    return pl.pallas_call(
        kernel,
        out_shape=jax.ShapeDtypeStruct((B_pad, OUT_pad), out_dtype),
        grid=grid,
        in_specs=in_specs,
        out_specs=out_specs,
        scratch_shapes=scratch,
        compiler_params=pltpu.CompilerParams(
            dimension_semantics=dims, vmem_limit_bytes=vmem_limit),
        cost_estimate=cost,
    )


# ----------------------------- public API -------------------------------------
class FCParams(NamedTuple):
    w_t: jax.Array        # (IN_pad, OUT_pad) pre-transposed, MXU-feed dtype
    b2: jax.Array         # (1, OUT_pad) float32
    in_features: int
    out_features: int


def prepare_fc_params(weight, bias, *, mxu_dtype=jnp.bfloat16):
    """One-time parameter prep (call at load time, NOT per forward call).

    weight: (OUT, IN) nn.Linear layout; bias: (OUT,).
    """
    OUT, IN = weight.shape
    assert bias.shape == (OUT,)
    IN_pad, OUT_pad = _round_up(IN, 128), _round_up(OUT, 128)
    w_t = jnp.transpose(weight).astype(mxu_dtype)          # (IN, OUT): no in-kernel .T
    if (IN_pad, OUT_pad) != (IN, OUT):
        w_t = jnp.pad(w_t, ((0, IN_pad - IN), (0, OUT_pad - OUT)))
    b2 = bias.astype(jnp.float32).reshape(1, OUT)
    if OUT_pad != OUT:
        b2 = jnp.pad(b2, ((0, 0), (0, OUT_pad - OUT)))
    return FCParams(w_t=w_t, b2=b2, in_features=IN, out_features=OUT)


def fc_apply(params, x, *, out_dtype=None, block_b=None, block_n=None,
             block_k=None, use_pallas=None, single_buffer_resident=True):
    """FC.forward: ReLU(x @ W^T + b) using prepared params."""
    w_t, b2 = params.w_t, params.b2
    IN, OUT = params.in_features, params.out_features
    B, IN_x = x.shape
    if IN_x != IN:
        raise ValueError(f"x has {IN_x} features, params expect {IN}")
    IN_pad, OUT_pad = w_t.shape
    out_dtype = np.dtype(x.dtype if out_dtype is None else out_dtype)
    x_dtype, w_dtype = np.dtype(x.dtype), np.dtype(w_t.dtype)

    # Tiny shapes: a standalone pallas_call is pure launch/DMA overhead.
    if use_pallas is None:
        use_pallas = 2 * B * IN * OUT >= _PALLAS_MIN_FLOPS
    if not use_pallas:
        xp = x.astype(w_dtype)
        if IN_pad != IN:
            xp = jnp.pad(xp, ((0, 0), (0, IN_pad - IN)))
        y = jnp.maximum(jnp.dot(xp, w_t, preferred_element_type=jnp.float32) + b2, 0.0)
        if OUT_pad != OUT:
            y = y[:, :OUT]
        return y.astype(out_dtype)

    # --- tile selection -------------------------------------------------------
    # Sublane packing of the MXU feed: bf16 packs 16 rows / vreg, f32 packs 8.
    row_align = 8 if w_dtype.itemsize >= 4 else (16 if w_dtype.itemsize == 2 else 32)

    if block_n is None and block_k is None:
        if IN_pad * OUT_pad * w_dtype.itemsize <= _RESIDENT_W_MAX:
            block_n, block_k = OUT_pad, IN_pad           # weight fully VMEM-resident
        else:
            n_mult = 256 if OUT_pad % 256 == 0 else 128  # 256 fills v6e/v7x MXU passes
            block_n = _choose_tile(OUT_pad, 1024, n_mult)
            max_k = max(128, min(IN_pad,
                                 (_W_TILE_TARGET // (block_n * w_dtype.itemsize))
                                 // 128 * 128))
            block_k = _choose_tile(IN_pad, max_k, 128)
    else:
        if block_n is None:
            block_n = OUT_pad
        if block_k is None:
            block_k = IN_pad
    assert OUT_pad % block_n == 0 and block_n % 128 == 0
    assert IN_pad % block_k == 0 and block_k % 128 == 0
    nn, nk = OUT_pad // block_n, IN_pad // block_k

    want_single = (single_buffer_resident and nn == 1 and hasattr(pl, "Buffered"))

    if block_b is None:
        w_fp = (1 if (want_single and nk == 1) else 2) * block_k * block_n * w_dtype.itemsize
        b_fp = (1 if want_single else 2) * block_n * 4
        per_row = (2 * block_k * x_dtype.itemsize
                   + 2 * block_n * out_dtype.itemsize
                   + (block_n * 4 if nk > 1 else 0))
        cap = (_VMEM_BUDGET - w_fp - b_fp) // per_row
        cap = max(row_align, min(1024, cap) // row_align * row_align)
        block_b = _choose_block_b(B, row_align, cap)
    else:
        block_b = _round_up(block_b, row_align)
    B_pad = _round_up(B, block_b)

    # --- pad x only when actually needed (batch tail / IN not 128-aligned) -----
    x_p = x
    if B_pad != B or IN_pad != IN:
        x_p = jnp.pad(x, ((0, B_pad - B), (0, IN_pad - IN)))

    def _run(single_buffer):
        call = _build_fc_pallas_call(B_pad, IN_pad, OUT_pad, block_b, block_n,
                                     block_k, x_dtype, w_dtype, out_dtype,
                                     single_buffer)
        return call(x_p, w_t, b2)

    if want_single:
        try:
            out = _run(True)
        except Exception:
            # Older jax without BlockSpec pipeline_mode / Buffered(1) support:
            # fall back to default double-buffering (correctness unchanged).
            out = _run(False)
    else:
        out = _run(False)

    if B_pad != B or OUT_pad != OUT:
        out = out[:B, :OUT]
    return out


def fc_forward(x, weight, bias, *, mxu_dtype=jnp.bfloat16, **kwargs):
    """One-shot convenience (re-preps params every call; in real models call
    prepare_fc_params() once and use fc_apply())."""
    return fc_apply(prepare_fc_params(weight, bias, mxu_dtype=mxu_dtype), x, **kwargs)


# ----------------------------- demo / self-test --------------------------------
if __name__ == "__main__":
    key = jax.random.PRNGKey(0)
    kx, kw, kb, kx2, kw2, kb2 = jax.random.split(key, 6)
    HI = jax.lax.Precision.HIGHEST

    # Nominal module shape: FC(inc=32, outc=16), ReLU, batch_norm=False, batch=8.
    B, IN, OUT = 8, 32, 16
    x = jax.random.normal(kx, (B, IN), jnp.float32)
    bound = 1.0 / jnp.sqrt(jnp.float32(IN))
    weight = jax.random.uniform(kw, (OUT, IN), jnp.float32, -bound, bound)
    bias = jax.random.uniform(kb, (OUT,), jnp.float32, -bound, bound)
    ref = jnp.maximum(jnp.matmul(x, weight.T, precision=HI) + bias, 0.0)

    # 1) Exact f32-MXU path through the Pallas kernel (resident, single-buffered W).
    p32 = prepare_fc_params(weight, bias, mxu_dtype=jnp.float32)
    out32 = jax.block_until_ready(fc_apply(p32, x, use_pallas=True))
    assert out32.shape == (B, OUT) and out32.dtype == x.dtype
    assert jnp.allclose(out32, ref, atol=1e-5, rtol=1e-5), "f32 Pallas mismatch"

    # 2) Default bf16-MXU feed (f32 accumulate + epilogue), Pallas path.
    pbf = prepare_fc_params(weight, bias)  # mxu_dtype=bf16 by default
    outbf = jax.block_until_ready(fc_apply(pbf, x, use_pallas=True))
    assert outbf.shape == (B, OUT)
    assert jnp.allclose(outbf, ref, atol=5e-2, rtol=5e-2), "bf16 Pallas mismatch"

    # 3) Auto small-shape XLA fast path (skips pallas_call at this tiny shape).
    outxla = jax.block_until_ready(fc_apply(pbf, x))
    assert jnp.allclose(outxla, ref, atol=5e-2, rtol=5e-2), "XLA fallback mismatch"

    # 4) Tiled path: batch x N x K grid (exercises the K-split accumulator kernel).
    B2, IN2, OUT2 = 32, 256, 256
    x2 = jax.random.normal(kx2, (B2, IN2), jnp.float32)
    bound2 = 1.0 / jnp.sqrt(jnp.float32(IN2))
    w2 = jax.random.uniform(kw2, (OUT2, IN2), jnp.float32, -bound2, bound2)
    b2_ = jax.random.uniform(kb2, (OUT2,), jnp.float32, -bound2, bound2)
    ref2 = jnp.maximum(jnp.matmul(x2, w2.T, precision=HI) + b2_, 0.0)
    p2 = prepare_fc_params(w2, b2_, mxu_dtype=jnp.float32)
    out2 = jax.block_until_ready(
        fc_apply(p2, x2, use_pallas=True, block_b=16, block_n=128, block_k=128))
    assert out2.shape == (B2, OUT2)
    assert jnp.allclose(out2, ref2, atol=1e-4, rtol=1e-4), "tiled Pallas mismatch"

    print("KERNEL_OK")
</pallas_src>

<mosaic_0001>
module attributes {stable_mosaic.version = 11 : i64} {
  func.func @_fc_kernel(%arg0: i32, %arg1: i32, %arg2: memref<8x128xf32, #tpu.memory_space<vmem>>, %arg3: memref<128x128xf32, #tpu.memory_space<vmem>>, %arg4: memref<1x128xf32, #tpu.memory_space<vmem>>, %arg5: memref<8x128xf32, #tpu.memory_space<vmem>>) attributes {dimension_semantics = [#tpu.dimension_semantics<parallel>, #tpu.dimension_semantics<parallel>], iteration_bounds = array<i64: 1, 1>, scalar_prefetch = 0 : i64, scratch_operands = 0 : i64, tpu.core_type = #tpu.core_type<tc>, window_params = [{transform_indices = @transform_0, window_bounds = array<i64: 8, 128>}, {pipeline_mode = #tpu.pipeline_mode<synchronous>, transform_indices = @transform_1, window_bounds = array<i64: 128, 128>}, {pipeline_mode = #tpu.pipeline_mode<synchronous>, transform_indices = @transform_2, window_bounds = array<i64: 1, 128>}, {transform_indices = @transform_3, window_bounds = array<i64: 8, 128>}]} {
    %c0 = arith.constant 0 : index
    %c0_0 = arith.constant 0 : index
    %0 = vector.load %arg2[%c0, %c0_0] : memref<8x128xf32, #tpu.memory_space<vmem>>, vector<8x128xf32>
    %c0_1 = arith.constant 0 : index
    %c0_2 = arith.constant 0 : index
    %1 = vector.load %arg3[%c0_1, %c0_2] : memref<128x128xf32, #tpu.memory_space<vmem>>, vector<128x128xf32>
    %cst = arith.constant dense<0.000000e+00> : vector<8x128xf32>
    %2 = tpu.matmul %0, %1, %cst {dimension_numbers = #tpu.dot_dimension_numbers<[1], [0], [0], [1], [0, 0, 1, 1], [], []>} : vector<8x128xf32>, vector<128x128xf32>, vector<8x128xf32> -> vector<8x128xf32>
    %c0_3 = arith.constant 0 : index
    %c0_4 = arith.constant 0 : index
    %3 = vector.load %arg4[%c0_3, %c0_4] : memref<1x128xf32, #tpu.memory_space<vmem>>, vector<1x128xf32>
    %4 = vector.broadcast %3 : vector<1x128xf32> to vector<8x128xf32>
    %5 = arith.addf %2, %4 : vector<8x128xf32>
    %cst_5 = arith.constant 0.000000e+00 : f32
    %6 = vector.broadcast %cst_5 : f32 to vector<8x128xf32>
    %7 = arith.maximumf %5, %6 : vector<8x128xf32>
    %c0_6 = arith.constant 0 : index
    %c0_7 = arith.constant 0 : index
    %8 = vector.load %arg5[%c0_6, %c0_7] : memref<8x128xf32, #tpu.memory_space<vmem>>, vector<8x128xf32>
    tpu.vector_store %arg5[%c0_6, %c0_7], %7 {strides = array<i32>} : memref<8x128xf32, #tpu.memory_space<vmem>>, vector<8x128xf32>,
    return
  }
  func.func @transform_0(%arg0: i32, %arg1: i32) -> (i32, i32) {
    %c0_i32 = arith.constant 0 : i32
    %c0_i32_0 = arith.constant 0 : i32
    return %arg0, %c0_i32 : i32, i32
  }
  func.func @transform_1(%arg0: i32, %arg1: i32) -> (i32, i32) {
    %c0_i32 = arith.constant 0 : i32
    %c0_i32_0 = arith.constant 0 : i32
    return %c0_i32, %arg1 : i32, i32
  }
  func.func @transform_2(%arg0: i32, %arg1: i32) -> (i32, i32) {
    %c0_i32 = arith.constant 0 : i32
    %c0_i32_0 = arith.constant 0 : i32
    return %c0_i32, %arg1 : i32, i32
  }
  func.func @transform_3(%arg0: i32, %arg1: i32) -> (i32, i32) {
    %c0_i32 = arith.constant 0 : i32
    return %arg0, %arg1 : i32, i32
  }
}

module attributes {stable_mosaic.version = 11 : i64} {
  func.func @_fc_kernel(%arg0: i32, %arg1: i32, %arg2: memref<8x128xf32, #tpu.memory_space<vmem>>, %arg3: memref<128x128xf32, #tpu.memory_space<vmem>>, %arg4: memref<1x128xf32, #tpu.memory_space<vmem>>, %arg5: memref<8x128xf32, #tpu.memory_space<vmem>>) attributes {dimension_semantics = [#tpu.dimension_semantics<parallel>, #tpu.dimension_semantics<parallel>], iteration_bounds = array<i64: 1, 1>, scalar_prefetch = 0 : i64, scratch_operands = 0 : i64, tpu.core_type = #tpu.core_type<tc>, window_params = [{transform_indices = @transform_0, window_bounds = array<i64: 8, 128>}, {transform_indices = @transform_1, window_bounds = array<i64: 128, 128>}, {transform_indices = @transform_2, window_bounds = array<i64: 1, 128>}, {transform_indices = @transform_3, window_bounds = array<i64: 8, 128>}]} {
    %c0 = arith.constant 0 : index
    %c0_0 = arith.constant 0 : index
    %0 = vector.load %arg2[%c0, %c0_0] : memref<8x128xf32, #tpu.memory_space<vmem>>, vector<8x128xf32>
    %c0_1 = arith.constant 0 : index
    %c0_2 = arith.constant 0 : index
    %1 = vector.load %arg3[%c0_1, %c0_2] : memref<128x128xf32, #tpu.memory_space<vmem>>, vector<128x128xf32>
    %cst = arith.constant dense<0.000000e+00> : vector<8x128xf32>
    %2 = tpu.matmul %0, %1, %cst {dimension_numbers = #tpu.dot_dimension_numbers<[1], [0], [0], [1], [0, 0, 1, 1], [], []>} : vector<8x128xf32>, vector<128x128xf32>, vector<8x128xf32> -> vector<8x128xf32>
    %c0_3 = arith.constant 0 : index
    %c0_4 = arith.constant 0 : index
    %3 = vector.load %arg4[%c0_3, %c0_4] : memref<1x128xf32, #tpu.memory_space<vmem>>, vector<1x128xf32>
    %4 = vector.broadcast %3 : vector<1x128xf32> to vector<8x128xf32>
    %5 = arith.addf %2, %4 : vector<8x128xf32>
    %cst_5 = arith.constant 0.000000e+00 : f32
    %6 = vector.broadcast %cst_5 : f32 to vector<8x128xf32>
    %7 = arith.maximumf %5, %6 : vector<8x128xf32>
    %c0_6 = arith.constant 0 : index
    %c0_7 = arith.constant 0 : index
    %8 = vector.load %arg5[%c0_6, %c0_7] : memref<8x128xf32, #tpu.memory_space<vmem>>, vector<8x128xf32>
    tpu.vector_store %arg5[%c0_6, %c0_7], %7 {strides = array<i32>} : memref<8x128xf32, #tpu.memory_space<vmem>>, vector<8x128xf32>,
    return
  }
  func.func @transform_0(%arg0: i32, %arg1: i32) -> (i32, i32) {
    %c0_i32 = arith.constant 0 : i32
    %c0_i32_0 = arith.constant 0 : i32
    return %arg0, %c0_i32 : i32, i32
  }
  func.func @transform_1(%arg0: i32, %arg1: i32) -> (i32, i32) {
    %c0_i32 = arith.constant 0 : i32
    %c0_i32_0 = arith.constant 0 : i32
    return %c0_i32, %arg1 : i32, i32
  }
  func.func @transform_2(%arg0: i32, %arg1: i32) -> (i32, i32) {
    %c0_i32 = arith.constant 0 : i32
    %c0_i32_0 = arith.constant 0 : i32
    return %c0_i32, %arg1 : i32, i32
  }
  func.func @transform_3(%arg0: i32, %arg1: i32) -> (i32, i32) {
    %c0_i32 = arith.constant 0 : i32
    return %arg0, %arg1 : i32, i32
  }
}

</mosaic_0001>

<bundles_post_ra>
// kernel: tpu_custom_call.1
= control target key start
LH: loop header
LB: loop body
LE: loop exit
PB: predicated region body
PF: predicated region fallthrough
CT: control target
= control target key end

     0   :  { %8 = vsyncpa [#allocation3], 0  ;;  %s384_s0 = inlined_call_operand.hbm [shape: f32[8,128], index: 0, kind: input, shape index: {}]   ;;  %s385_s1 = inlined_call_operand.hbm [shape: f32[128,128], index: 1, kind: input, shape index: {}]   ;;  %s386_s2 = inlined_call_operand.vmem [shape: f32[1,128], index: 2, kind: input, shape index: {}]   ;;  %s387_s3 = inlined_call_operand.hbm [shape: f32[8,128], index: 3, kind: output, shape index: {}]  }
   0x1   :  { %9 = vsyncpa [#allocation6], 0 }
   0x2   :  { %10 = vsyncpa [#allocation4], 0  ;;  %s310_s12 = smov [#allocation2]   ;;  %s311_s14 = smov [#allocation5]  }
   0x3   :  { %s17_s13 = sshll.u32 %s310_s12, 4  ;;  %s26_s15 = sshll.u32 %s311_s14, 4  ;;  %s18_s13 = int_to_ptr.vmem [resolvable:$true] %s17_s13  ;;  %s338_s15 = int_to_ptr.vmem [resolvable:$true] %s26_s15 }
   0x4   :  { %s238_s18 = scalar_lea.hbm %s384_s0, 128 }
   0x5   :  { %p239_p0 = scmp.ne.s32.totalorder %s384_s0, %s238_s18  ;;  %p242_p1 = scmp.lt.u32.totalorder %s238_s18, %s384_s0 }
   0x7   :  { %p244_p2 = pnand %p242_p1, %p239_p0 }
   0x9   :  { %247 = shalt.err (!%p244_p2)
}
   0xa   :  { %s248_s23 = scalar_lea.vmem %s18_s13, 128  ;;  %p253_p4 = scmp.lt.s32.totalorder %s18_s13, %s18_s13 }
   0xb   :  { %p249_p3 = scmp.ne.s32.totalorder %s18_s13, %s248_s23  ;;  %p254_p5 = scmp.lt.s32.totalorder %s248_s23, %s248_s23 }
   0xd   :  { %p255_p6 = por %p254_p5, %p253_p4 }
   0xf   :  { %p256_p7 = pnand %p255_p6, %p249_p3 }
  0x11   :  { %259 = shalt.err (!%p256_p7)
}
  0x12   :  { %20 = dma.hbm_to_vmem [thread:$0]  %s384_s0, 128, %s18_s13, [#allocation3]  }
  0x13   :  { %s260_s28 = scalar_lea.hbm %s385_s1, 2048 }
  0x14   :  { %p261_p8 = scmp.ne.s32.totalorder %s385_s1, %s260_s28  ;;  %p264_p9 = scmp.lt.u32.totalorder %s260_s28, %s385_s1 }
  0x16   :  { %p266_p10 = pnand %p264_p9, %p261_p8 }
  0x18   :  { %269 = shalt.err (!%p266_p10)
}
  0x19   :  { %s270_s6 = scalar_lea.vmem %s338_s15, 2048  ;;  %p275_p12 = scmp.lt.s32.totalorder %s338_s15, %s338_s15 }
  0x1a   :  { %p271_p11 = scmp.ne.s32.totalorder %s338_s15, %s270_s6  ;;  %p276_p13 = scmp.lt.s32.totalorder %s270_s6, %s270_s6 }
  0x1c   :  { %p277_p0 = por %p276_p13, %p275_p12 }
  0x1e   :  { %p278_p1 = pnand %p277_p0, %p271_p11 }
  0x20   :  { %281 = shalt.err (!%p278_p1)
}
  0x21   :  { %s312_s0 = smov 128   ;;  %s313_s7 = smov 8  }
  0x22   :  { %32 = dma.hbm_to_vmem [thread:$0]  %s385_s1, 2048, %s338_s15, [#allocation6], %s312_s0, %s312_s0, %s313_s7  }
  0x23   :  { %304 = dma.done.wait [#allocation3], 128  }
  0x24   :  { %305 = vsyncadd [#allocation3], 4294967168 }
  0x25   :  { %306 = dma.done.wait [#allocation6], 2048  }
  0x26   :  { %307 = vsyncadd [#allocation6], 4294965248  ;;  %v314_v0 = vmov 0.0|0.0   ;;  %vm315_vm0 = vmmov 0   ;;  %v316_v1 = vmov 0.0   ;;  %v42_v2 = vld [vmem:[#allocation5] sm:$0xff] }
  0x27   :  { %206 = vmatprep.subr.bf16.mxu0 %v314_v0  ;;  %203 = vmatprep.mubr.msk.f32.mxu0 %vm315_vm0, %v316_v1  ;;  %v43_v3 = vld [vmem:[#allocation5 + $0x8] sm:$0xff]  ;;  %v44_v4 = vld [vmem:[#allocation5 + $0x10] sm:$0xff]  ;;  %v45_v6 = vld [vmem:[#allocation5 + $0x18] sm:$0xff]  ;;  %s317_s11 = smov [#allocation7]  }
  0x28   :  { %v207_v5 = vpack.c.bf16 %v43_v3, %v42_v2  ;;  %v210_v7 = vpack.c.bf16 %v45_v6, %v44_v4  ;;  %v46_v8 = vld [vmem:[#allocation5 + $0x20] sm:$0xff]  ;;  %v47_v9 = vld [vmem:[#allocation5 + $0x28] sm:$0xff]  ;;  %v48_v11 = vld [vmem:[#allocation5 + $0x30] sm:$0xff]  ;;  %s143_s12 = sshll.u32 %s317_s11, 4  ;;  %s144_s12 = int_to_ptr.vmem [resolvable:$true] %s143_s12 }
  0x29   :  { %v213_v10 = vpack.c.bf16 %v47_v9, %v46_v8  ;;  %v49_v12 = vld [vmem:[#allocation5 + $0x38] sm:$0xff]  ;;  %v50_v14 = vld [vmem:[#allocation5 + $0x40] sm:$0xff]  ;;  %v51_v15 = vld [vmem:[#allocation5 + $0x48] sm:$0xff]  ;;  %s282_s13 = scalar_lea.vmem %s144_s12, 128  ;;  %p287_p3 = scmp.lt.s32.totalorder %s144_s12, %s144_s12 }
  0x2a   :  { %208 = vmatpush3.bf16.msra.mxu0 %v207_v5  ;;  %v216_v13 = vpack.c.bf16 %v49_v12, %v48_v11  ;;  %v219_v16 = vpack.c.bf16 %v51_v15, %v50_v14  ;;  %v52_v17 = vld [vmem:[#allocation5 + $0x50] sm:$0xff]  ;;  %v53_v18 = vld [vmem:[#allocation5 + $0x58] sm:$0xff]  ;;  %v54_v20 = vld [vmem:[#allocation5 + $0x60] sm:$0xff]  ;;  %p283_p2 = scmp.ne.s32.totalorder %s144_s12, %s282_s13  ;;  %p288_p4 = scmp.lt.s32.totalorder %s282_s13, %s282_s13 }
  0x2b   :  { %209 = vmatprep.subr.bf16.mxu0 %v314_v0  ;;  %v222_v19 = vpack.c.bf16 %v53_v18, %v52_v17  ;;  %v55_v21 = vld [vmem:[#allocation5 + $0x68] sm:$0xff]  ;;  %v56_v23 = vld [vmem:[#allocation5 + $0x70] sm:$0xff]  ;;  %v57_v24 = vld [vmem:[#allocation5 + $0x78] sm:$0xff] }
  0x2c   :  { %v225_v22 = vpack.c.bf16 %v55_v21, %v54_v20  ;;  %v228_v25 = vpack.c.bf16 %v57_v24, %v56_v23  ;;  %v41_v26 = vld [vmem:[#allocation2] sm:$0xff]  ;;  %p289_p5 = por %p288_p4, %p287_p3 }
  0x2d   :  { %v153_v27 = vld [vmem:[%s386_s2] ss:$0 sm:$0xff] }
  0x2e   :  { %211 = vmatpush3.bf16.msra.mxu0 %v210_v7  ;;  %p290_p6 = pnand %p289_p5, %p283_p2 }
  0x2f   :  { %212 = vmatprep.subr.bf16.mxu0 %v314_v0 }
  0x32   :  { %214 = vmatpush3.bf16.msra.mxu0 %v213_v10 }
  0x33   :  { %215 = vmatprep.subr.bf16.mxu0 %v314_v0 }
  0x36   :  { %217 = vmatpush3.bf16.msra.mxu0 %v216_v13 }
  0x37   :  { %218 = vmatprep.subr.bf16.mxu0 %v314_v0 }
  0x3a   :  { %220 = vmatpush3.bf16.msra.mxu0 %v219_v16 }
  0x3b   :  { %221 = vmatprep.subr.bf16.mxu0 %v314_v0 }
  0x3e   :  { %223 = vmatpush3.bf16.msra.mxu0 %v222_v19 }
  0x3f   :  { %224 = vmatprep.subr.bf16.mxu0 %v314_v0 }
  0x42   :  { %226 = vmatpush3.bf16.msra.mxu0 %v225_v22 }
  0x43   :  { %227 = vmatprep.subr.bf16.mxu0 %v314_v0 }
  0x46   :  { %229 = vmatpush3.bf16.msra.mxu0 %v228_v25 }
  0x49   :  { %204 = vmatmul.mubr.f32.vlgmr.msra.gmra.mrb[0].mxu0 %v41_v26 }
 0x11c   :  { %v131_v28 = vpop.f32.mrb[0].mxu0 }
 0x11d   :  { %v132_v29 = vadd.f32 %v153_v27, %v131_v28  ;;  %v205_v30 = vpop.f32.mrb[1].mxu0 }
 0x11f   :  { %v135_v31 = vmax.f32 %v132_v29, 0.0 }
 0x121   :  { %136 = vst [vmem:[#allocation7] sm:$0xff] %v135_v31 }
 0x122   :  { %293 = shalt.err (!%p290_p6)
}
 0x123   :  { %s294_s16 = scalar_lea.hbm %s387_s3, 128 }
 0x124   :  { %p295_p7 = scmp.ne.s32.totalorder %s387_s3, %s294_s16  ;;  %p298_p8 = scmp.lt.u32.totalorder %s294_s16, %s387_s3 }
 0x126   :  { %p300_p9 = pnand %p298_p8, %p295_p7 }
 0x128   :  { %303 = shalt.err (!%p300_p9)
}
 0x129   :  { %146 = dma.vmem_to_hbm [thread:$0]  %s144_s12, 128, %s387_s3, [#allocation4]  }
 0x12a   :  { %308 = dma.done.wait [#allocation4], 128  }
 0x12b   :  { %309 = vsyncadd [#allocation4], 4294967168 }
 0x12c   :  { %150 = vsyncpa [#allocation3], 1 }
 0x12d   :  { %151 = vsyncpa [#allocation6], 1 }
 0x12e   :  { %152 = vsyncpa [#allocation4], 1 }

// kernel: tpu_custom_call.1
= control target key start
LH: loop header
LB: loop body
LE: loop exit
PB: predicated region body
PF: predicated region fallthrough
CT: control target
= control target key end

     0   :  { %8 = vsyncpa [#allocation3], 0  ;;  %s384_s0 = inlined_call_operand.hbm [shape: f32[8,128], index: 0, kind: input, shape index: {}]   ;;  %s385_s1 = inlined_call_operand.hbm [shape: f32[128,128], index: 1, kind: input, shape index: {}]   ;;  %s386_s2 = inlined_call_operand.vmem [shape: f32[1,128], index: 2, kind: input, shape index: {}]   ;;  %s387_s3 = inlined_call_operand.hbm [shape: f32[8,128], index: 3, kind: output, shape index: {}]  }
   0x1   :  { %9 = vsyncpa [#allocation6], 0 }
   0x2   :  { %10 = vsyncpa [#allocation4], 0  ;;  %s310_s12 = smov [#allocation2]   ;;  %s311_s14 = smov [#allocation5]  }
   0x3   :  { %s17_s13 = sshll.u32 %s310_s12, 4  ;;  %s26_s15 = sshll.u32 %s311_s14, 4  ;;  %s18_s13 = int_to_ptr.vmem [resolvable:$true] %s17_s13  ;;  %s338_s15 = int_to_ptr.vmem [resolvable:$true] %s26_s15 }
   0x4   :  { %s238_s18 = scalar_lea.hbm %s384_s0, 128 }
   0x5   :  { %p239_p0 = scmp.ne.s32.totalorder %s384_s0, %s238_s18  ;;  %p242_p1 = scmp.lt.u32.totalorder %s238_s18, %s384_s0 }
   0x7   :  { %p244_p2 = pnand %p242_p1, %p239_p0 }
   0x9   :  { %247 = shalt.err (!%p244_p2)
}
   0xa   :  { %s248_s23 = scalar_lea.vmem %s18_s13, 128  ;;  %p253_p4 = scmp.lt.s32.totalorder %s18_s13, %s18_s13 }
   0xb   :  { %p249_p3 = scmp.ne.s32.totalorder %s18_s13, %s248_s23  ;;  %p254_p5 = scmp.lt.s32.totalorder %s248_s23, %s248_s23 }
   0xd   :  { %p255_p6 = por %p254_p5, %p253_p4 }
   0xf   :  { %p256_p7 = pnand %p255_p6, %p249_p3 }
  0x11   :  { %259 = shalt.err (!%p256_p7)
}
  0x12   :  { %20 = dma.hbm_to_vmem [thread:$0]  %s384_s0, 128, %s18_s13, [#allocation3]  }
  0x13   :  { %s260_s28 = scalar_lea.hbm %s385_s1, 2048 }
  0x14   :  { %p261_p8 = scmp.ne.s32.totalorder %s385_s1, %s260_s28  ;;  %p264_p9 = scmp.lt.u32.totalorder %s260_s28, %s385_s1 }
  0x16   :  { %p266_p10 = pnand %p264_p9, %p261_p8 }
  0x18   :  { %269 = shalt.err (!%p266_p10)
}
  0x19   :  { %s270_s6 = scalar_lea.vmem %s338_s15, 2048  ;;  %p275_p12 = scmp.lt.s32.totalorder %s338_s15, %s338_s15 }
  0x1a   :  { %p271_p11 = scmp.ne.s32.totalorder %s338_s15, %s270_s6  ;;  %p276_p13 = scmp.lt.s32.totalorder %s270_s6, %s270_s6 }
  0x1c   :  { %p277_p0 = por %p276_p13, %p275_p12 }
  0x1e   :  { %p278_p1 = pnand %p277_p0, %p271_p11 }
  0x20   :  { %281 = shalt.err (!%p278_p1)
}
  0x21   :  { %s312_s0 = smov 128   ;;  %s313_s7 = smov 8  }
  0x22   :  { %32 = dma.hbm_to_vmem [thread:$0]  %s385_s1, 2048, %s338_s15, [#allocation6], %s312_s0, %s312_s0, %s313_s7  }
  0x23   :  { %304 = dma.done.wait [#allocation3], 128  }
  0x24   :  { %305 = vsyncadd [#allocation3], 4294967168 }
  0x25   :  { %306 = dma.done.wait [#allocation6], 2048  }
  0x26   :  { %307 = vsyncadd [#allocation6], 4294965248  ;;  %v314_v0 = vmov 0.0|0.0   ;;  %vm315_vm0 = vmmov 0   ;;  %v316_v1 = vmov 0.0   ;;  %v42_v2 = vld [vmem:[#allocation5] sm:$0xff] }
  0x27   :  { %206 = vmatprep.subr.bf16.mxu0 %v314_v0  ;;  %203 = vmatprep.mubr.msk.f32.mxu0 %vm315_vm0, %v316_v1  ;;  %v43_v3 = vld [vmem:[#allocation5 + $0x8] sm:$0xff]  ;;  %v44_v4 = vld [vmem:[#allocation5 + $0x10] sm:$0xff]  ;;  %v45_v6 = vld [vmem:[#allocation5 + $0x18] sm:$0xff]  ;;  %s317_s11 = smov [#allocation7]  }
  0x28   :  { %v207_v5 = vpack.c.bf16 %v43_v3, %v42_v2  ;;  %v210_v7 = vpack.c.bf16 %v45_v6, %v44_v4  ;;  %v46_v8 = vld [vmem:[#allocation5 + $0x20] sm:$0xff]  ;;  %v47_v9 = vld [vmem:[#allocation5 + $0x28] sm:$0xff]  ;;  %v48_v11 = vld [vmem:[#allocation5 + $0x30] sm:$0xff]  ;;  %s143_s12 = sshll.u32 %s317_s11, 4  ;;  %s144_s12 = int_to_ptr.vmem [resolvable:$true] %s143_s12 }
  0x29   :  { %v213_v10 = vpack.c.bf16 %v47_v9, %v46_v8  ;;  %v49_v12 = vld [vmem:[#allocation5 + $0x38] sm:$0xff]  ;;  %v50_v14 = vld [vmem:[#allocation5 + $0x40] sm:$0xff]  ;;  %v51_v15 = vld [vmem:[#allocation5 + $0x48] sm:$0xff]  ;;  %s282_s13 = scalar_lea.vmem %s144_s12, 128  ;;  %p287_p3 = scmp.lt.s32.totalorder %s144_s12, %s144_s12 }
  0x2a   :  { %208 = vmatpush3.bf16.msra.mxu0 %v207_v5  ;;  %v216_v13 = vpack.c.bf16 %v49_v12, %v48_v11  ;;  %v219_v16 = vpack.c.bf16 %v51_v15, %v50_v14  ;;  %v52_v17 = vld [vmem:[#allocation5 + $0x50] sm:$0xff]  ;;  %v53_v18 = vld [vmem:[#allocation5 + $0x58] sm:$0xff]  ;;  %v54_v20 = vld [vmem:[#allocation5 + $0x60] sm:$0xff]  ;;  %p283_p2 = scmp.ne.s32.totalorder %s144_s12, %s282_s13  ;;  %p288_p4 = scmp.lt.s32.totalorder %s282_s13, %s282_s13 }
  0x2b   :  { %209 = vmatprep.subr.bf16.mxu0 %v314_v0  ;;  %v222_v19 = vpack.c.bf16 %v53_v18, %v52_v17  ;;  %v55_v21 = vld [vmem:[#allocation5 + $0x68] sm:$0xff]  ;;  %v56_v23 = vld [vmem:[#allocation5 + $0x70] sm:$0xff]  ;;  %v57_v24 = vld [vmem:[#allocation5 + $0x78] sm:$0xff] }
  0x2c   :  { %v225_v22 = vpack.c.bf16 %v55_v21, %v54_v20  ;;  %v228_v25 = vpack.c.bf16 %v57_v24, %v56_v23  ;;  %v41_v26 = vld [vmem:[#allocation2] sm:$0xff]  ;;  %p289_p5 = por %p288_p4, %p287_p3 }
  0x2d   :  { %v153_v27 = vld [vmem:[%s386_s2] ss:$0 sm:$0xff] }
  0x2e   :  { %211 = vmatpush3.bf16.msra.mxu0 %v210_v7  ;;  %p290_p6 = pnand %p289_p5, %p283_p2 }
  0x2f   :  { %212 = vmatprep.subr.bf16.mxu0 %v314_v0 }
  0x32   :  { %214 = vmatpush3.bf16.msra.mxu0 %v213_v10 }
  0x33   :  { %215 = vmatprep.subr.bf16.mxu0 %v314_v0 }
  0x36   :  { %217 = vmatpush3.bf16.msra.mxu0 %v216_v13 }
  0x37   :  { %218 = vmatprep.subr.bf16.mxu0 %v314_v0 }
  0x3a   :  { %220 = vmatpush3.bf16.msra.mxu0 %v219_v16 }
  0x3b   :  { %221 = vmatprep.subr.bf16.mxu0 %v314_v0 }
  0x3e   :  { %223 = vmatpush3.bf16.msra.mxu0 %v222_v19 }
  0x3f   :  { %224 = vmatprep.subr.bf16.mxu0 %v314_v0 }
  0x42   :  { %226 = vmatpush3.bf16.msra.mxu0 %v225_v22 }
  0x43   :  { %227 = vmatprep.subr.bf16.mxu0 %v314_v0 }
  0x46   :  { %229 = vmatpush3.bf16.msra.mxu0 %v228_v25 }
  0x49   :  { %204 = vmatmul.mubr.f32.vlgmr.msra.gmra.mrb[0].mxu0 %v41_v26 }
 0x11c   :  { %v131_v28 = vpop.f32.mrb[0].mxu0 }
 0x11d   :  { %v132_v29 = vadd.f32 %v153_v27, %v131_v28  ;;  %v205_v30 = vpop.f32.mrb[1].mxu0 }
 0x11f   :  { %v135_v31 = vmax.f32 %v132_v29, 0.0 }
 0x121   :  { %136 = vst [vmem:[#allocation7] sm:$0xff] %v135_v31 }
 0x122   :  { %293 = shalt.err (!%p290_p6)
}
 0x123   :  { %s294_s16 = scalar_lea.hbm %s387_s3, 128 }
 0x124   :  { %p295_p7 = scmp.ne.s32.totalorder %s387_s3, %s294_s16  ;;  %p298_p8 = scmp.lt.u32.totalorder %s294_s16, %s387_s3 }
 0x126   :  { %p300_p9 = pnand %p298_p8, %p295_p7 }
 0x128   :  { %303 = shalt.err (!%p300_p9)
}
 0x129   :  { %146 = dma.vmem_to_hbm [thread:$0]  %s144_s12, 128, %s387_s3, [#allocation4]  }
 0x12a   :  { %308 = dma.done.wait [#allocation4], 128  }
 0x12b   :  { %309 = vsyncadd [#allocation4], 4294967168 }
 0x12c   :  { %150 = vsyncpa [#allocation3], 1 }
 0x12d   :  { %151 = vsyncpa [#allocation6], 1 }
 0x12e   :  { %152 = vsyncpa [#allocation4], 1 }

</bundles_post_ra>
